<compile_context>
chip_gen: v6e
topology: v6e:2x2x1
jax: 0.10.0
libtpu: 0.0.40
codegen_flags: <defaults>
</compile_context>

<pallas_src>
import jax
import jax.numpy as jnp
from jax.experimental import pallas as pl
from jax.experimental.pallas import tpu as pltpu

# ---------------- problem sizes (small synthetic "Cora") ----------------
N_NODES = 128      # number of graph nodes
F_IN = 64          # dataset.num_node_features
HIDDEN = 16        # GCNConv(F_IN, 16)
N_CLASSES = 8      # dataset.num_classes
N_EDGES = 512

LANE = 128
F_IN_PAD = 128     # input features padded to a full lane width
HIDDEN_PAD = 128   # hidden channels padded to a full lane width
CLASS_PAD = 128    # class logits padded to a full lane width
NEG_BIG = -1e9     # additive mask for padded class lanes

# packed-parameter row offsets (each section starts on an 8-row boundary)
W1_OFF = 0
B1_OFF = W1_OFF + F_IN_PAD        # 128
W2_OFF = B1_OFF + 8               # 136
B2M_OFF = W2_OFF + HIDDEN_PAD     # 264  (b2 + additive class mask, one row)
PACK_ROWS = B2M_OFF + 8           # 272


# ---------------- Pallas kernels ----------------------------------------
def _xw_kernel(x_ref, p_ref, xw_ref):
    # x_ref: (TM, F_IN_PAD) bf16 row tile of X; p_ref: packed params
    # xw_ref: (TM, HIDDEN_PAD) bf16 = X_tile @ W1  (computed once per row)
    w1 = p_ref[W1_OFF:W1_OFF + F_IN_PAD, :]                     # (128, 128) bf16
    xw_ref[...] = jnp.dot(x_ref[...], w1,
                          preferred_element_type=jnp.float32).astype(jnp.bfloat16)


def _layer1_kernel(a_ref, xw_ref, p_ref, hw_ref):
    # a_ref: (TM, N) bf16 row tile of A_hat; xw_ref: (N, 128) bf16 (full XW)
    # hw_ref: (TM, 128) bf16 = relu(A_tile @ XW + b1) @ W2
    b1 = p_ref[B1_OFF:B1_OFF + 1, :].astype(jnp.float32)         # (1, 128)
    w2 = p_ref[W2_OFF:W2_OFF + HIDDEN_PAD, :]                    # (128, 128) bf16

    # GCNConv layer 1 aggregation + bias, bf16 in / f32 accumulate.
    h = jnp.dot(a_ref[...], xw_ref[...],
                preferred_element_type=jnp.float32) + b1         # (TM, 128)
    # relu; dropout is identity in eval mode (training=False).
    # TODO(synk): training-mode dropout would use pltpu.prng_random_bits here.
    h = jnp.maximum(h, 0.0).astype(jnp.bfloat16)

    # layer-2 feature transform fused here (each H row transformed once).
    hw_ref[...] = jnp.dot(h, w2,
                          preferred_element_type=jnp.float32).astype(jnp.bfloat16)


def _layer2_kernel(a_ref, hw_ref, p_ref, o_ref):
    # a_ref: (TM, N) bf16 row tile; hw_ref: (N, 128) bf16 (full HW)
    # o_ref: (TM, 128) bf16 log-probs (lane-padded, padded lanes ~ -1e9)
    b2m = p_ref[B2M_OFF:B2M_OFF + 1, :].astype(jnp.float32)      # b2 + class mask

    # GCNConv layer 2 aggregation: A_tile @ HW + (b2 + mask).
    z = jnp.dot(a_ref[...], hw_ref[...],
                preferred_element_type=jnp.float32) + b2m        # (TM, 128)

    # log_softmax over classes; padded lanes carry -1e9 so exp underflows to 0.
    m = jnp.max(z, axis=1, keepdims=True)
    lse = m + jnp.log(jnp.sum(jnp.exp(z - m), axis=1, keepdims=True))
    o_ref[...] = (z - lse).astype(o_ref.dtype)


# ---------------- wrapper ------------------------------------------------
def _row_tile(n, tm):
    tm = min(tm, n)
    # guarantee >= 2 grid steps so v7x megacore sharding has work per core
    while n // tm < 2 and tm > 8:
        tm //= 2
    assert n % tm == 0 and tm % 8 == 0, "node count must tile into 8-row blocks"
    return tm


def gcn_forward(a_hat_bf16, x_pad_bf16, packed_params, *, tm=256):
    n = a_hat_bf16.shape[0]
    tm = _row_tile(n, tm)
    grid = (n // tm,)
    cparams = pltpu.CompilerParams(
        dimension_semantics=("parallel",),
        vmem_limit_bytes=32 * 1024 * 1024,
    )
    param_spec = pl.BlockSpec((PACK_ROWS, LANE), lambda i: (0, 0))

    # ---- XW = X @ W1 (computed once, hoisted out of the aggregation) ----
    cost_xw = pl.CostEstimate(
        flops=2 * n * F_IN_PAD * HIDDEN_PAD,
        transcendentals=0,
        bytes_accessed=2 * (n * F_IN_PAD + PACK_ROWS * LANE + n * HIDDEN_PAD),
    )
    xw = pl.pallas_call(
        _xw_kernel,
        out_shape=jax.ShapeDtypeStruct((n, HIDDEN_PAD), jnp.bfloat16),
        grid=grid,
        in_specs=[
            pl.BlockSpec((tm, F_IN_PAD), lambda i: (i, 0)),     # X row tile
            param_spec,                                          # packed params
        ],
        out_specs=pl.BlockSpec((tm, HIDDEN_PAD), lambda i: (i, 0)),
        compiler_params=cparams,
        cost_estimate=cost_xw,
    )(x_pad_bf16, packed_params)

    # ---- layer 1: HW = relu(A @ XW + b1) @ W2 (A-tile streaming) --------
    cost1 = pl.CostEstimate(
        flops=2 * n * n * HIDDEN_PAD + 2 * n * HIDDEN_PAD * CLASS_PAD,
        transcendentals=0,
        bytes_accessed=2 * (n * n + n * HIDDEN_PAD + PACK_ROWS * LANE
                            + n * CLASS_PAD),
    )
    hw = pl.pallas_call(
        _layer1_kernel,
        out_shape=jax.ShapeDtypeStruct((n, CLASS_PAD), jnp.bfloat16),
        grid=grid,
        in_specs=[
            pl.BlockSpec((tm, n), lambda i: (i, 0)),            # A_hat row tile
            pl.BlockSpec((n, HIDDEN_PAD), lambda i: (0, 0)),    # XW (full, DMA'd once)
            param_spec,
        ],
        out_specs=pl.BlockSpec((tm, CLASS_PAD), lambda i: (i, 0)),
        compiler_params=cparams,
        cost_estimate=cost1,
    )(a_hat_bf16, xw, packed_params)

    # ---- layer 2: log_softmax(A @ HW + b2) (A-tile streaming) -----------
    cost2 = pl.CostEstimate(
        flops=2 * n * n * CLASS_PAD,
        transcendentals=n * CLASS_PAD,
        bytes_accessed=2 * (n * n + n * CLASS_PAD + PACK_ROWS * LANE
                            + n * CLASS_PAD),
    )
    out = pl.pallas_call(
        _layer2_kernel,
        out_shape=jax.ShapeDtypeStruct((n, CLASS_PAD), jnp.bfloat16),
        grid=grid,
        in_specs=[
            pl.BlockSpec((tm, n), lambda i: (i, 0)),            # A_hat row tile
            pl.BlockSpec((n, CLASS_PAD), lambda i: (0, 0)),     # HW (full, DMA'd once)
            param_spec,
        ],
        out_specs=pl.BlockSpec((tm, CLASS_PAD), lambda i: (i, 0)),
        compiler_params=cparams,
        cost_estimate=cost2,
    )(a_hat_bf16, hw, packed_params)

    return out[:, :N_CLASSES]   # drop padded class lanes


# ---------------- glue: adjacency, params --------------------------------
def normalized_adjacency(edge_index, n):
    # Dense A with scatter-add (matches PyG multigraph semantics),
    # add_remaining_self_loops, then symmetric D^{-1/2} (A+I) D^{-1/2}.
    src, dst = edge_index[0], edge_index[1]
    a = jnp.zeros((n, n), jnp.float32).at[dst, src].add(1.0)
    diag = jnp.diagonal(a)
    idx = jnp.arange(n)
    a = a.at[idx, idx].set(jnp.where(diag > 0, diag, 1.0))
    deg = jnp.sum(a, axis=1)
    d_inv_sqrt = jnp.where(deg > 0, 1.0 / jnp.sqrt(deg), 0.0)
    return d_inv_sqrt[:, None] * a * d_inv_sqrt[None, :]


def pack_params(w1, b1, w2, b2):
    p = jnp.zeros((PACK_ROWS, LANE), jnp.float32)
    p = p.at[W1_OFF:W1_OFF + F_IN, :HIDDEN].set(w1)
    p = p.at[B1_OFF, :HIDDEN].set(b1)
    p = p.at[W2_OFF:W2_OFF + HIDDEN, :N_CLASSES].set(w2)
    # b2 fused with the additive class-padding mask (0 real, -1e9 padded)
    b2m = jnp.full((LANE,), NEG_BIG, jnp.float32).at[:N_CLASSES].set(b2)
    p = p.at[B2M_OFF, :].set(b2m)
    return p.astype(jnp.bfloat16)


def pad_features(x):
    n = x.shape[0]
    xp = jnp.zeros((n, F_IN_PAD), jnp.float32)
    return xp.at[:, :F_IN].set(x).astype(jnp.bfloat16)


def glorot(key, shape):
    fan_in, fan_out = shape
    limit = jnp.sqrt(6.0 / (fan_in + fan_out))
    return jax.random.uniform(key, shape, jnp.float32, -limit, limit)


def gcn_reference(a, x, w1, b1, w2, b2):
    h = jnp.maximum(a @ (x @ w1) + b1, 0.0)
    z = a @ (h @ w2) + b2
    return jax.nn.log_softmax(z, axis=1)


if __name__ == "__main__":
    key = jax.random.PRNGKey(0)
    k_x, k_e1, k_e2, k_w1, k_w2 = jax.random.split(key, 5)

    # synthetic node features and edge_index
    x = jax.random.normal(k_x, (N_NODES, F_IN), jnp.float32)
    src = jax.random.randint(k_e1, (N_EDGES,), 0, N_NODES, jnp.int32)
    dst = jax.random.randint(k_e2, (N_EDGES,), 0, N_NODES, jnp.int32)
    edge_index = jnp.stack([src, dst], axis=0)                # (2, E)

    # deterministic parameters (PyG GCNConv: glorot weight, zero bias)
    w1 = glorot(k_w1, (F_IN, HIDDEN))
    b1 = jnp.zeros((HIDDEN,), jnp.float32)
    w2 = glorot(k_w2, (HIDDEN, N_CLASSES))
    b2 = jnp.zeros((N_CLASSES,), jnp.float32)

    a_hat = normalized_adjacency(edge_index, N_NODES)
    packed = pack_params(w1, b1, w2, b2)
    x_pad = pad_features(x)

    out = gcn_forward(a_hat.astype(jnp.bfloat16), x_pad, packed)
    out = jax.block_until_ready(out)

    assert out.shape == (N_NODES, N_CLASSES)
    out_f32 = out.astype(jnp.float32)
    # log_softmax rows must sum to 1 in probability space (bf16 writeback)
    assert jnp.allclose(jnp.sum(jnp.exp(out_f32), axis=1), 1.0, atol=1e-2)
    # match the pure-f32 reference within bf16 matmul/store tolerance
    ref = gcn_reference(a_hat, x, w1, b1, w2, b2)
    assert jnp.max(jnp.abs(out_f32 - ref)) < 7.5e-2

    print("KERNEL_OK")
</pallas_src>

<mosaic_0001>
module attributes {stable_mosaic.version = 11 : i64} {
  func.func @_xw_kernel(%arg0: i32, %arg1: memref<64x128xbf16, #tpu.memory_space<vmem>>, %arg2: memref<272x128xbf16, #tpu.memory_space<vmem>>, %arg3: memref<64x128xbf16, #tpu.memory_space<vmem>>) attributes {dimension_semantics = [#tpu.dimension_semantics<parallel>], iteration_bounds = array<i64: 2>, scalar_prefetch = 0 : i64, scratch_operands = 0 : i64, tpu.core_type = #tpu.core_type<tc>, window_params = [{transform_indices = @transform_0, window_bounds = array<i64: 64, 128>}, {pipeline_mode = #tpu.pipeline_mode<synchronous>, transform_indices = @transform_1, window_bounds = array<i64: 272, 128>}, {transform_indices = @transform_2, window_bounds = array<i64: 64, 128>}]} {
    %c0 = arith.constant 0 : index
    %c0_0 = arith.constant 0 : index
    %0 = vector.load %arg2[%c0, %c0_0] : memref<272x128xbf16, #tpu.memory_space<vmem>>, vector<128x128xbf16>
    %c0_1 = arith.constant 0 : index
    %c0_2 = arith.constant 0 : index
    %1 = vector.load %arg1[%c0_1, %c0_2] : memref<64x128xbf16, #tpu.memory_space<vmem>>, vector<64x128xbf16>
    %cst = arith.constant dense<0.000000e+00> : vector<64x128xf32>
    %2 = tpu.matmul %1, %0, %cst {dimension_numbers = #tpu.dot_dimension_numbers<[1], [0], [0], [1], [0, 0, 1, 1], [], []>} : vector<64x128xbf16>, vector<128x128xbf16>, vector<64x128xf32> -> vector<64x128xf32>
    %3 = arith.truncf %2 : vector<64x128xf32> to vector<64x128xbf16>
    %c0_3 = arith.constant 0 : index
    %c0_4 = arith.constant 0 : index
    %4 = vector.load %arg3[%c0_3, %c0_4] : memref<64x128xbf16, #tpu.memory_space<vmem>>, vector<64x128xbf16>
    tpu.vector_store %arg3[%c0_3, %c0_4], %3 {strides = array<i32>} : memref<64x128xbf16, #tpu.memory_space<vmem>>, vector<64x128xbf16>,
    return
  }
  func.func @transform_0(%arg0: i32) -> (i32, i32) {
    %c0_i32 = arith.constant 0 : i32
    %c0_i32_0 = arith.constant 0 : i32
    return %arg0, %c0_i32 : i32, i32
  }
  func.func @transform_1(%arg0: i32) -> (i32, i32) {
    %c0_i32 = arith.constant 0 : i32
    %c0_i32_0 = arith.constant 0 : i32
    %c0_i32_1 = arith.constant 0 : i32
    return %c0_i32, %c0_i32_0 : i32, i32
  }
  func.func @transform_2(%arg0: i32) -> (i32, i32) {
    %c0_i32 = arith.constant 0 : i32
    %c0_i32_0 = arith.constant 0 : i32
    return %arg0, %c0_i32 : i32, i32
  }
}

</mosaic_0001>

<bundles_post_ra>
// kernel: tpu_custom_call.1
= control target key start
LH: loop header
LB: loop body
LE: loop exit
PB: predicated region body
PF: predicated region fallthrough
CT: control target
= control target key end

     0   :  { %7 = vsyncpa [#allocation3], 0  ;;  %s1011_s0 = inlined_call_operand.hbm [shape: bf16[128,128], index: 0, kind: input, shape index: {}]   ;;  %s1012_s1 = inlined_call_operand.hbm [shape: bf16[272,128], index: 1, kind: input, shape index: {}]   ;;  %s1013_s2 = inlined_call_operand.hbm [shape: bf16[128,128], index: 2, kind: output, shape index: {}]  }
   0x1   :  { %9 = vsyncpa [#allocation3 + $0x1], 0 }
   0x2   :  { %10 = vsyncpa [#allocation6], 0 }
   0x3   :  { %11 = vsyncpa [#allocation4], 0 }
   0x4   :  { %13 = vsyncpa [#allocation4 + $0x1], 0  ;;  %s818_s9 = smov 0   ;;  %s820_s10 = smov 0  }
   0x5   :  { %s822_s11 = smov 0   ;;  %s824_s12 = smov 0  }
   0x6 LB: > { %s839_s13 = sadd.s32 4294967295, %s794_s12   ;;  %s478_s14 = sadd.s32 4294967294, %s794_s12   ;;  %s794_s12 = sphi %s824_s12, %s1035_s12   ;;  %s790_s11 = sphi %s822_s11, %s1034_s11   ;;  %s786_s10 = sphi %s820_s10, %s1033_s10   ;;  %s782_s9 = sphi %s818_s9, %s1032_s9  }
   0x7   : > { %p39_p0 = scmp.ne.s32.totalorder %s786_s10, %s782_s9  ;;  %p1014_p1 = scmp.eq.s32.totalorder %s839_s13, 0 }
   0x8   : > { %p90_p3 = scmp.eq.s32.totalorder %s478_s14, 1  ;;  %p479_p5 = scmp.ge.s32.totalorder %s794_s12, 1 }
   0x9   : > { %p848_p4 = por %p1014_p1, %p39_p0  ;;  %p97_p7 = scmp.lt.s32.totalorder %s794_s12, 3 }
   0xa   : > { %p853_p6 = por %p90_p3, %p39_p0  ;;  %s796_s18 = smov [#allocation5]  }
   0xb   : > { %s1018_s15 = scalar_select %p848_p4, 1, 0 }
   0xc   : > { %s1019_s16 = scalar_select %p853_p6, 1, 0 }
   0xd   : > { %p858_p8 = pnand %p479_p5, %p97_p7  ;;  %s109_s19 = sshll.u32 %s796_s18, 4  ;;  %s110_s19 = int_to_ptr.vmem [resolvable:$true] %s109_s19 }
   0xe   : > { %s872_s21 = sadd.s32 1, %s794_s12   ;;  %s26_s22 = sadd.s32 1, %s790_s11 }
   0xf   : > { %s1020_s17 = scalar_select %p858_p8, 1, 0 }
  0x10   : > { %p607_p9 = pneg %p858_p8  ;;  %s23_s23 = ssub.s32 %s794_s12, %s872_s21 }
  0x11   : > { %s683_s24 = scalar_lea.vmem %s110_s19, 2176  ;;  %p691_p5 = scmp.lt.s32.totalorder %s110_s19, %s110_s19 }
  0x12   : > { %p867_p11 = pnand %p607_p9, %p1014_p1  ;;  %p684_p13 = scmp.ne.s32.totalorder %s110_s19, %s683_s24 }
  0x13   : > { %p692_p7 = scmp.lt.s32.totalorder %s683_s24, %s683_s24 }
  0x14   : > { %p674_p12 = pneg %p867_p11 }
  0x15   : > { %p693_p10 = por %p692_p7, %p691_p5 }
  0x16   : > { %p686_p0 = pnand %p684_p13, %p674_p12 }
  0x18   : > { %p687_p3 = pneg %p686_p0 }
  0x1a   : > { %p694_p2 = pnand %p693_p10, %p687_p3 }
  0x1c   : > { %697 = shalt.err (!%p694_p2)
}
  0x1d   : > { %s797_s25 = smov 64   ;;  %s798_s26 = smov 4  }
  0x1e   : > { %610 = dma.hbm_to_vmem [thread:$0]  (!%p867_p11), %s1012_s1, 2176, %s110_s19, [#allocation6], %s797_s25, %s797_s25, %s798_s26  }
  0x1f   : > { %p24_p2 = scmp.eq.s32.totalorder %s23_s23, 0  ;;  %p33_p9 = scmp.ne.s32.totalorder %s790_s11, %s786_s10 }
  0x20   : > { %p34_p10 = scmp.eq.s32.totalorder %s794_s12, 0  ;;  %p620_p12 = scmp.lt.s32.totalorder %s794_s12, 2 }
  0x21   : > { %s892_s29 = scalar_select %p24_p2, %s790_s11, %s26_s22  }
  0x22   : > { %p35_p13 = por %p34_p10, %p33_p9  ;;  %p1022_p0 = scmp.eq.s32.totalorder %s839_s13, 1 }
  0x23   : > { %s123_s3 = sand.u32 1, %s790_s11   ;;  %s514_s4 = sshll.u32 %s794_s12, 9 }
  0x24   : > { %p896_p3 = por %p1022_p0, %p33_p9  ;;  %s482_s5 = sshll.u32 %s123_s3, 5 }
  0x25   : > { %s905_s8 = scalar_lea.hbm %s1011_s0, %s514_s4  ;;  %s127_s14 = scalar_lea.vmem [#allocation2], %s482_s5 }
  0x26   : > { %s1023_s30 = scalar_select %p896_p3, 1, 0 }
  0x27   : > { %s134_s18 = sshll.u32 %s127_s14, 4  ;;  %p907_p11 = pnand %p620_p12, %p35_p13  ;;  %s911_s18 = int_to_ptr.vmem [resolvable:$true] %s134_s18 }
  0x28   : > { %s913_s20 = scalar_lea.sflag [#allocation3], %s123_s3  ;;  %s698_s22 = scalar_lea.hbm %s905_s8, 512 }
  0x29   : > { %p699_p5 = scmp.ne.s32.totalorder %s905_s8, %s698_s22  ;;  %p700_p7 = pneg %p907_p11 }
  0x2a   : > { %s703_s27 = scalar_lea.hbm %s1011_s0, 1024  ;;  %p704_p10 = scmp.lt.s32.totalorder %s905_s8, %s1011_s0 }
  0x2b   : > { %p701_p2 = pnand %p700_p7, %p699_p5  ;;  %p705_p12 = scmp.lt.s32.totalorder %s703_s27, %s698_s22 }
  0x2d   : > { %p702_p9 = pneg %p701_p2  ;;  %p706_p13 = por %p705_p12, %p704_p10 }
  0x2f   : > { %p707_p0 = pnand %p706_p13, %p702_p9 }
  0x31   : > { %710 = shalt.err (!%p707_p0)
}
  0x32   : > { %s711_s3 = scalar_lea.vmem %s911_s18, 512  ;;  %s799_s5 = smov [#allocation2]  }
  0x33   : > { %p712_p1 = scmp.ne.s32.totalorder %s911_s18, %s711_s3  ;;  %s716_s6 = sshll.u32 %s799_s5, 4  ;;  %s717_s6 = int_to_ptr.vmem [resolvable:$false] %s716_s6 }
  0x34   : > { %s718_s7 = scalar_lea.vmem %s717_s6, 1024  ;;  %p719_p2 = scmp.lt.s32.totalorder %s911_s18, %s717_s6 }
  0x35   : > { %p714_p6 = pnand %p712_p1, %p700_p7  ;;  %p720_p3 = scmp.lt.s32.totalorder %s718_s7, %s711_s3 }
  0x37   : > { %p715_p5 = pneg %p714_p6  ;;  %p721_p4 = por %p720_p3, %p719_p2 }
  0x39   : > { %p722_p8 = pnand %p721_p4, %p715_p5 }
  0x3b   : > { %725 = shalt.err (!%p722_p8)
}
  0x3c   : > { %614 = dma.hbm_to_vmem [thread:$0]  (!%p907_p11), %s905_s8, 512, %s911_s18, %s913_s20, %s797_s25, %s797_s25, %s798_s26  }
  0x3d   : > { %p1025_p1 = scmp.ne.s32.totalorder %s1020_s17, 0 }
  0x3e   : > { %s940_s14 = sand.u32 (!%p1025_p1), 1, %s786_s10   ;;  %p1026_p4 = scmp.ne.s32.totalorder (!%p1025_p1), %s1018_s15, 0 }
  0x3f   : > { %146 = sbr.rel (%p1025_p1) target bundleno = 320 (0x140), region = 28  ;;  %s486_s22 = sshll.u32 (!%p1025_p1), %s940_s14, 5 }
  0x40   : > { %s149_s23 = scalar_lea.sflag (!%p1025_p1), [#allocation3], %s940_s14  ;;  %s946_s19 = scalar_lea.vmem (!%p1025_p1), [#allocation2], %s486_s22 }
  0x44   : > { %769 = dma.done.wait (%p1026_p4), %s149_s23, 512  }
  0x45   : > { %771 = vsyncadd (%p1026_p4), %s149_s23, 4294966784  ;;  %p1027_p6 = scmp.eq.s32.totalorder %s839_s13, 0 }
  0x47   : > { %773 = dma.done.wait (%p1027_p6), [#allocation6], 2176   ;;  %p1028_p8 = pmov %p1027_p6 }
  0x48   : > { %v660_v0 = vld [vmem:[#allocation5 + $0x38] sm:$0xff]   ;;  %v661_v1 = vld [vmem:[#allocation5 + $0x30] sm:$0xff]   ;;  %v662_v2 = vld [vmem:[#allocation5 + $0x28] sm:$0xff]   ;;  %s176_s15 = scalar_lea.vmem [#allocation7], %s486_s22  ;;  %s523_s25 = sshll.u32 %s839_s13, 9 }
  0x49   : > { %775 = vsyncadd (%p1028_p8), [#allocation6], 4294965120  ;;  %559 = vmatprep.subr.bf16.mxu0 %v660_v0  ;;  %583 = vmatprep.subr.bf16.mxu1 %v660_v0  ;;  %v663_v3 = vld [vmem:[#allocation5 + $0x20] sm:$0xff]   ;;  %v669_v5 = vld [vmem:[%s946_s19 + $0x10] sm:$0xff]   ;;  %s395_s17 = sshll.u32 %s176_s15, 4  ;;  %s968_s18 = scalar_lea.hbm %s1013_s2, %s523_s25  ;;  %s963_s17 = int_to_ptr.vmem [resolvable:$true] %s395_s17 }
  0x4a   : > { %560 = vmatpush3.bf16.msra.mxu0 %v660_v0  ;;  %591 = vmatpush3.bf16.msra.mxu1 %v660_v0  ;;  %v668_v4 = vld [vmem:[%s946_s19] sm:$0xff]   ;;  %v664_v6 = vld [vmem:[#allocation5 + $0x18] sm:$0xff]   ;;  %v665_v7 = vld [vmem:[#allocation5 + $0x10] sm:$0xff]   ;;  %s382_s13 = scalar_lea.sflag [#allocation4], %s940_s14  ;;  %s726_s20 = scalar_lea.vmem %s963_s17, 512 }
  0x4b   : > { %561 = vmatprep.subr.bf16.mxu0 %v661_v1  ;;  %584 = vmatprep.subr.bf16.mxu1 %v661_v1  ;;  %v666_v8 = vld [vmem:[#allocation5 + $0x8] sm:$0xff]   ;;  %v667_v9 = vld [vmem:[#allocation5] sm:$0xff]   ;;  %v671_v11 = vld [vmem:[%s946_s19 + $0x18] sm:$0xff]   ;;  %p727_p3 = scmp.ne.s32.totalorder %s963_s17, %s726_s20  ;;  %p1029_p11 = scmp.ne.s32.totalorder %s1023_s30, 0 }
  0x4c   : > { %575 = vmatprep.mubr.bf16.mxu0 %v668_v4  ;;  %579 = vmatprep.mubr.bf16.mxu1 %v669_v5  ;;  %v670_v10 = vld [vmem:[%s946_s19 + $0x8] sm:$0xff]   ;;  %s800_s24 = smov [#allocation7]  }
  0x4d   : > { %p728_p7 = pnand %p727_p3, %p1029_p11  ;;  %s730_s27 = sshll.u32 %s800_s24, 4  ;;  %s731_s27 = int_to_ptr.vmem [resolvable:$false] %s730_s27 }
  0x4e   : > { %562 = vmatpush3.bf16.msra.mxu0 %v661_v1  ;;  %592 = vmatpush3.bf16.msra.mxu1 %v661_v1  ;;  %s732_s28 = scalar_lea.vmem %s731_s27, 1024  ;;  %p733_p10 = scmp.lt.s32.totalorder %s963_s17, %s731_s27 }
  0x4f   : > { %563 = vmatprep.subr.bf16.mxu0 %v662_v2  ;;  %585 = vmatprep.subr.bf16.mxu1 %v662_v2  ;;  %p729_p9 = pneg %p728_p7  ;;  %p734_p12 = scmp.lt.s32.totalorder %s732_s28, %s726_s20 }
  0x51   : > { %p735_p13 = por %p734_p12, %p733_p10 }
  0x52   : > { %564 = vmatpush3.bf16.msra.mxu0 %v662_v2  ;;  %593 = vmatpush3.bf16.msra.mxu1 %v662_v2 }
  0x53   : > { %565 = vmatprep.subr.bf16.mxu0 %v663_v3  ;;  %586 = vmatprep.subr.bf16.mxu1 %v663_v3  ;;  %p736_p0 = pnand %p735_p13, %p729_p9 }
  0x56   : > { %566 = vmatpush3.bf16.msra.mxu0 %v663_v3  ;;  %594 = vmatpush3.bf16.msra.mxu1 %v663_v3 }
  0x57   : > { %567 = vmatprep.subr.bf16.mxu0 %v664_v6  ;;  %587 = vmatprep.subr.bf16.mxu1 %v664_v6 }
  0x5a   : > { %568 = vmatpush3.bf16.msra.mxu0 %v664_v6  ;;  %595 = vmatpush3.bf16.msra.mxu1 %v664_v6 }
  0x5b   : > { %569 = vmatprep.subr.bf16.mxu0 %v665_v7  ;;  %588 = vmatprep.subr.bf16.mxu1 %v665_v7 }
  0x5e   : > { %570 = vmatpush3.bf16.msra.mxu0 %v665_v7  ;;  %596 = vmatpush3.bf16.msra.mxu1 %v665_v7 }
  0x5f   : > { %571 = vmatprep.subr.bf16.mxu0 %v666_v8  ;;  %589 = vmatprep.subr.bf16.mxu1 %v666_v8 }
  0x62   : > { %572 = vmatpush3.bf16.msra.mxu0 %v666_v8  ;;  %597 = vmatpush3.bf16.msra.mxu1 %v666_v8 }
  0x63   : > { %573 = vmatprep.subr.bf16.mxu0 %v667_v9  ;;  %590 = vmatprep.subr.bf16.mxu1 %v667_v9 }
  0x66   : > { %574 = vmatpush3.bf16.msra.mxu0 %v667_v9  ;;  %598 = vmatpush3.bf16.msra.mxu1 %v667_v9 }
  0x69   : > { %576 = vmatmul.mubr.bf16.vlgmr.msra.gmra.mxu0 %v670_v10  ;;  %580 = vmatmul.mubr.bf16.vlgmr.msra.gmra.mxu1 %v671_v11 }
 0x129   : > { %v577_v12 = vpop.f32.mrf.mxu0  ;;  %v581_v13 = vpop.f32.mrf.mxu1 }
 0x12b   : > { %v310_v14 = vpop.f32.mrf.mxu0  ;;  %v326_v15 = vpop.f32.mrf.mxu1 }
 0x12d   : > { %v578_v16 = vpop.f32.mrf.mxu0  ;;  %v582_v17 = vpop.f32.mrf.mxu1 }
 0x12e   : > { %v532_v18 = vpack.c.bf16 %v578_v16, %v577_v12  ;;  %v542_v19 = vpack.c.bf16 %v582_v17, %v581_v13 }
 0x12f   : > { %v313_v20 = vpop.f32.mrf.mxu0  ;;  %v329_v21 = vpop.f32.mrf.mxu1 }
 0x130   : > { %544 = vst [vmem:[%s176_s15 + $0x8] sm:$0xff] %v532_v18   ;;  %546 = vst [vmem:[%s176_s15 + $0x18] sm:$0xff] %v542_v19   ;;  %v527_v22 = vpack.c.bf16 %v313_v20, %v310_v14  ;;  %v537_v23 = vpack.c.bf16 %v329_v21, %v326_v15 }
 0x132   : > { %528 = vst [vmem:[%s176_s15] sm:$0xff] %v527_v22   ;;  %545 = vst [vmem:[%s176_s15 + $0x10] sm:$0xff] %v537_v23  }
 0x133   : > { %739 = shalt.err (!%p736_p0)
}
 0x134   : > { %s740_s4 = scalar_lea.hbm %s968_s18, 512  ;;  %s744_s6 = scalar_lea.hbm %s1013_s2, 1024 }
 0x135   : > { %p741_p5 = scmp.ne.s32.totalorder %s968_s18, %s740_s4  ;;  %p745_p4 = scmp.lt.s32.totalorder %s968_s18, %s1013_s2 }
 0x136   : > { %p746_p6 = scmp.lt.s32.totalorder %s744_s6, %s740_s4 }
 0x137   : > { %p742_p2 = pnand %p741_p5, %p1029_p11 }
 0x138   : > { %p747_p8 = por %p746_p6, %p745_p4 }
 0x139   : > { %p743_p1 = pneg %p742_p2 }
 0x13b   : > { %p748_p3 = pnand %p747_p8, %p743_p1 }
 0x13d   : > { %751 = shalt.err (!%p748_p3)
}
 0x13e   : > { %s801_s23 = smov 64   ;;  %s802_s19 = smov 4  }
 0x13f   : > { %605 = dma.vmem_to_hbm [thread:$0]  (%p1029_p11), %s963_s17, 512, %s968_s18, %s382_s13, %s801_s23, %s801_s23, %s802_s19  }
 0x140 PF: > { %s410_s15 = sand.u32 1, %s782_s9   ;;  %p1030_p7 = scmp.ne.s32.totalorder %s1019_s16, 0 }
 0x141   : > { %p1031_p9 = scmp.ge.s32.totalorder %s794_s12, 2  ;;  %s411_s25 = scalar_lea.sflag [#allocation4], %s410_s15 }
 0x143   : > { %p616_p10 = pnand %p1031_p9, %p1030_p7 }
 0x145   : > { %p617_p12 = pneg %p616_p10 }
 0x147   : > { %777 = dma.done.wait (%p617_p12), %s411_s25, 512  }
 0x148   : > { %779 = vsyncadd (%p617_p12), %s411_s25, 4294966784  ;;  %p16_p13 = scmp.ge.s32.totalorder %s872_s21, 4   ;;  %s1032_s9 = smov %s786_s10 }
 0x149   : > { %s1033_s10 = smov %s790_s11  ;;  %s1034_s11 = smov %s892_s29 }
 0x14a   : > { %s1035_s12 = smov %s872_s21  ;;  %18 = sbr.rel (!%p16_p13) target bundleno = 6 (0x6), region = 77 }
 0x14f   :  { %416 = vsyncpa [#allocation3], 1 }
 0x150   :  { %418 = vsyncpa [#allocation3 + $0x1], 1 }
 0x151   :  { %419 = vsyncpa [#allocation6], 1 }
 0x152   :  { %420 = vsyncpa [#allocation4], 1 }
 0x153   :  { %422 = vsyncpa [#allocation4 + $0x1], 1 }

</bundles_post_ra>
